<compile_context>
chip_gen: v6e
topology: v6e:2x2x1
jax: 0.10.0
libtpu: 0.0.40
codegen_flags: <defaults>
</compile_context>

<pallas_src>
import functools

import jax
import jax.numpy as jnp
from jax.experimental import pallas as pl
from jax.experimental.pallas import tpu as pltpu

SUBLANE = 8  # f32 sublane granularity: tiled batch blocks are multiples of this


def _round_up(n, m):
    return ((n + m - 1) // m) * m


def qnetwork_kernel(x_ref, w1_ref, b1_ref, w2_ref, b2_ref, w3_ref, b3_ref, o_ref):
    """One batch tile of the MLP. MXU operands in w*_ref.dtype, f32 accumulation."""
    cdt = w1_ref.dtype  # MXU operand dtype (f32 default; bf16 optional on v6e/v7x)
    # fc1 + ReLU  (x cast in-kernel; no-op when cdt == f32)
    x = x_ref[...].astype(cdt)
    h1 = jnp.dot(x, w1_ref[...], preferred_element_type=jnp.float32)
    h1 = jnp.maximum(h1 + b1_ref[...], 0.0)
    # fc2 + ReLU
    h2 = jnp.dot(h1.astype(cdt), w2_ref[...], preferred_element_type=jnp.float32)
    h2 = jnp.maximum(h2 + b2_ref[...], 0.0)
    # fc3 (unpadded out_dim columns -> narrow masked store, minimal HBM writeback)
    out = jnp.dot(h2.astype(cdt), w3_ref[...], preferred_element_type=jnp.float32)
    o_ref[...] = (out + b3_ref[...]).astype(o_ref.dtype)


@functools.partial(
    jax.jit, static_argnames=("single_step_rows", "tile_rows", "compute_dtype"))
def qnetwork_forward(x, params, *, single_step_rows=8192, tile_rows=4096,
                     compute_dtype=jnp.float32):
    """x: (B, input_dim) float32. params: dict w1,b1,w2,b2,w3,b3 (W as (in,out))."""
    B, input_dim = x.shape
    hidden1 = params["w1"].shape[1]      # 128
    hidden2 = params["w2"].shape[1]      # 64
    out_dim = params["w3"].shape[1]      # logical output dim (e.g. 4)

    # Weights are tiny (~70 KB) and DMA'd once per call -> pre-cast is fine.
    # Biases stay f32 (added post-accumulation); x is NOT touched here.
    w1 = params["w1"].astype(compute_dtype)
    w2 = params["w2"].astype(compute_dtype)
    w3 = params["w3"].astype(compute_dtype)
    b1, b2, b3 = params["b1"], params["b2"], params["b3"]

    if B <= single_step_rows:
        # Single grid step: block equals the full batch dim (legal for any B),
        # so there is no padding, no dead rows and no per-step overhead.
        tb = B
        grid = (1,)
    else:
        # Large batch: tile with an even number of steps so v7x's two
        # TensorCores split the work evenly.  Ragged last tile is handled by
        # Pallas (rows are independent, OOB output rows are never written).
        n_steps = 2 * pl.cdiv(B, 2 * tile_rows)
        tb = _round_up(pl.cdiv(B, n_steps), SUBLANE)
        grid = (pl.cdiv(B, tb),)

    const = lambda i: (0, 0)  # weights/biases: same block every step -> VMEM-resident
    grid_spec = pl.GridSpec(
        grid=grid,
        in_specs=[
            pl.BlockSpec((tb, input_dim), lambda i: (i, 0)),   # x: streamed per tile
            pl.BlockSpec((input_dim, hidden1), const),
            pl.BlockSpec((1, hidden1), const),
            pl.BlockSpec((hidden1, hidden2), const),
            pl.BlockSpec((1, hidden2), const),
            pl.BlockSpec((hidden2, out_dim), const),
            pl.BlockSpec((1, out_dim), const),
        ],
        out_specs=pl.BlockSpec((tb, out_dim), lambda i: (i, 0)),
    )

    return pl.pallas_call(
        qnetwork_kernel,
        grid_spec=grid_spec,
        out_shape=jax.ShapeDtypeStruct((B, out_dim), jnp.float32),
        compiler_params=pltpu.CompilerParams(
            # Batch tiles are independent -> shard across v7x's 2 TensorCores.
            dimension_semantics=("parallel",),
            # x/out tiles + resident weights + activation scratch stay well
            # under 32 MiB for tb <= 8192, so this also fits v7x's 64 MiB VMEM.
            vmem_limit_bytes=32 * 1024 * 1024,
        ),
    )(x, w1, b1, w2, b2, w3, b3)


def init_params(key, input_dim, output_dim):
    """Deterministic init mimicking PyTorch nn.Linear default U(-1/sqrt(fan_in), +)."""
    dims = [(input_dim, 128), (128, 64), (64, output_dim)]
    params = {}
    keys = jax.random.split(key, 2 * len(dims))
    for i, (fan_in, fan_out) in enumerate(dims):
        bound = 1.0 / jnp.sqrt(jnp.float32(fan_in))
        params[f"w{i + 1}"] = jax.random.uniform(
            keys[2 * i], (fan_in, fan_out), minval=-bound, maxval=bound, dtype=jnp.float32)
        params[f"b{i + 1}"] = jax.random.uniform(
            keys[2 * i + 1], (1, fan_out), minval=-bound, maxval=bound, dtype=jnp.float32)
    return params


def _ref_forward(x, p):
    h1 = jnp.maximum(x @ p["w1"] + p["b1"], 0.0)
    h2 = jnp.maximum(h1 @ p["w2"] + p["b2"], 0.0)
    return h2 @ p["w3"] + p["b3"]


if __name__ == "__main__":
    key = jax.random.PRNGKey(0)
    k_param, k_x, k_xl = jax.random.split(key, 3)

    input_dim = 8    # small state vector
    output_dim = 4   # small discrete action space
    params = init_params(k_param, input_dim, output_dim)

    # Small shape matching the module spec (batch=2): single grid step, no padding.
    x_small = jax.random.normal(k_x, (2, input_dim), dtype=jnp.float32)
    out_small = jax.block_until_ready(qnetwork_forward(x_small, params))
    ref_small = _ref_forward(x_small, params)
    assert out_small.shape == (2, output_dim)
    assert jnp.allclose(out_small, ref_small, atol=1e-5, rtol=1e-5)

    # Larger batch: still a single grid step with the default thresholds.
    x_large = jax.random.normal(k_xl, (1048, input_dim), dtype=jnp.float32)
    out_large = jax.block_until_ready(qnetwork_forward(x_large, params))
    ref_large = _ref_forward(x_large, params)
    assert out_large.shape == (1048, output_dim)
    assert jnp.allclose(out_large, ref_large, atol=1e-4, rtol=1e-4)

    # Force the tiled path (even-length grid, ragged last tile handled by Pallas).
    out_tiled = jax.block_until_ready(
        qnetwork_forward(x_large, params, single_step_rows=256, tile_rows=256))
    assert jnp.allclose(out_tiled, ref_large, atol=1e-4, rtol=1e-4)

    # Optional bf16 MXU-operand path (v6e/v7x): x cast in-kernel, f32 accumulation.
    # Intermediate activations h1/h2 are intentionally quantized to bf16 too,
    # hence the looser tolerance.
    out_bf16 = jax.block_until_ready(
        qnetwork_forward(x_large, params, compute_dtype=jnp.bfloat16))
    assert jnp.allclose(out_bf16, ref_large, atol=5e-2, rtol=5e-2)

    print("KERNEL_OK")
</pallas_src>

<mosaic_0001>
module attributes {stable_mosaic.version = 11 : i64} {
  func.func @qnetwork_kernel(%arg0: i32, %arg1: memref<2x8xf32, #tpu.memory_space<vmem>>, %arg2: memref<8x128xf32, #tpu.memory_space<vmem>>, %arg3: memref<1x128xf32, #tpu.memory_space<vmem>>, %arg4: memref<128x64xf32, #tpu.memory_space<vmem>>, %arg5: memref<1x64xf32, #tpu.memory_space<vmem>>, %arg6: memref<64x4xf32, #tpu.memory_space<vmem>>, %arg7: memref<1x4xf32, #tpu.memory_space<vmem>>, %arg8: memref<2x4xf32, #tpu.memory_space<vmem>>) attributes {dimension_semantics = [#tpu.dimension_semantics<parallel>], iteration_bounds = array<i64: 1>, scalar_prefetch = 0 : i64, scratch_operands = 0 : i64, tpu.core_type = #tpu.core_type<tc>, window_params = [{transform_indices = @transform_0, window_bounds = array<i64: 2, 8>}, {pipeline_mode = #tpu.pipeline_mode<synchronous>, transform_indices = @transform_1, window_bounds = array<i64: 8, 128>}, {pipeline_mode = #tpu.pipeline_mode<synchronous>, transform_indices = @transform_2, window_bounds = array<i64: 1, 128>}, {pipeline_mode = #tpu.pipeline_mode<synchronous>, transform_indices = @transform_3, window_bounds = array<i64: 128, 64>}, {pipeline_mode = #tpu.pipeline_mode<synchronous>, transform_indices = @transform_4, window_bounds = array<i64: 1, 64>}, {pipeline_mode = #tpu.pipeline_mode<synchronous>, transform_indices = @transform_5, window_bounds = array<i64: 64, 4>}, {pipeline_mode = #tpu.pipeline_mode<synchronous>, transform_indices = @transform_6, window_bounds = array<i64: 1, 4>}, {transform_indices = @transform_7, window_bounds = array<i64: 2, 4>}]} {
    %c0 = arith.constant 0 : index
    %c0_0 = arith.constant 0 : index
    %0 = vector.load %arg1[%c0, %c0_0] : memref<2x8xf32, #tpu.memory_space<vmem>>, vector<2x8xf32>
    %c0_1 = arith.constant 0 : index
    %c0_2 = arith.constant 0 : index
    %1 = vector.load %arg2[%c0_1, %c0_2] : memref<8x128xf32, #tpu.memory_space<vmem>>, vector<8x128xf32>
    %cst = arith.constant dense<0.000000e+00> : vector<2x128xf32>
    %2 = tpu.matmul %0, %1, %cst {dimension_numbers = #tpu.dot_dimension_numbers<[1], [0], [0], [1], [0, 0, 1, 1], [], []>} : vector<2x8xf32>, vector<8x128xf32>, vector<2x128xf32> -> vector<2x128xf32>
    %c0_3 = arith.constant 0 : index
    %c0_4 = arith.constant 0 : index
    %3 = vector.load %arg3[%c0_3, %c0_4] : memref<1x128xf32, #tpu.memory_space<vmem>>, vector<1x128xf32>
    %4 = vector.broadcast %3 : vector<1x128xf32> to vector<2x128xf32>
    %5 = arith.addf %2, %4 : vector<2x128xf32>
    %cst_5 = arith.constant 0.000000e+00 : f32
    %6 = vector.broadcast %cst_5 : f32 to vector<2x128xf32>
    %7 = arith.maximumf %5, %6 : vector<2x128xf32>
    %c0_6 = arith.constant 0 : index
    %c0_7 = arith.constant 0 : index
    %8 = vector.load %arg4[%c0_6, %c0_7] : memref<128x64xf32, #tpu.memory_space<vmem>>, vector<128x64xf32>
    %cst_8 = arith.constant dense<0.000000e+00> : vector<2x64xf32>
    %9 = tpu.matmul %7, %8, %cst_8 {dimension_numbers = #tpu.dot_dimension_numbers<[1], [0], [0], [1], [0, 0, 1, 1], [], []>} : vector<2x128xf32>, vector<128x64xf32>, vector<2x64xf32> -> vector<2x64xf32>
    %c0_9 = arith.constant 0 : index
    %c0_10 = arith.constant 0 : index
    %10 = vector.load %arg5[%c0_9, %c0_10] : memref<1x64xf32, #tpu.memory_space<vmem>>, vector<1x64xf32>
    %11 = vector.broadcast %10 : vector<1x64xf32> to vector<2x64xf32>
    %12 = arith.addf %9, %11 : vector<2x64xf32>
    %cst_11 = arith.constant 0.000000e+00 : f32
    %13 = vector.broadcast %cst_11 : f32 to vector<2x64xf32>
    %14 = arith.maximumf %12, %13 : vector<2x64xf32>
    %c0_12 = arith.constant 0 : index
    %c0_13 = arith.constant 0 : index
    %15 = vector.load %arg6[%c0_12, %c0_13] : memref<64x4xf32, #tpu.memory_space<vmem>>, vector<64x4xf32>
    %cst_14 = arith.constant dense<0.000000e+00> : vector<2x4xf32>
    %16 = tpu.matmul %14, %15, %cst_14 {dimension_numbers = #tpu.dot_dimension_numbers<[1], [0], [0], [1], [0, 0, 1, 1], [], []>} : vector<2x64xf32>, vector<64x4xf32>, vector<2x4xf32> -> vector<2x4xf32>
    %c0_15 = arith.constant 0 : index
    %c0_16 = arith.constant 0 : index
    %17 = vector.load %arg7[%c0_15, %c0_16] : memref<1x4xf32, #tpu.memory_space<vmem>>, vector<1x4xf32>
    %18 = vector.broadcast %17 : vector<1x4xf32> to vector<2x4xf32>
    %19 = arith.addf %16, %18 : vector<2x4xf32>
    %c0_17 = arith.constant 0 : index
    %c0_18 = arith.constant 0 : index
    %20 = vector.load %arg8[%c0_17, %c0_18] : memref<2x4xf32, #tpu.memory_space<vmem>>, vector<2x4xf32>
    tpu.vector_store %arg8[%c0_17, %c0_18], %19 {strides = array<i32>} : memref<2x4xf32, #tpu.memory_space<vmem>>, vector<2x4xf32>,
    return
  }
  func.func @transform_0(%arg0: i32) -> (i32, i32) {
    %c0_i32 = arith.constant 0 : i32
    %c0_i32_0 = arith.constant 0 : i32
    return %arg0, %c0_i32 : i32, i32
  }
  func.func @transform_1(%arg0: i32) -> (i32, i32) {
    %c0_i32 = arith.constant 0 : i32
    %c0_i32_0 = arith.constant 0 : i32
    %c0_i32_1 = arith.constant 0 : i32
    return %c0_i32, %c0_i32_0 : i32, i32
  }
  func.func @transform_2(%arg0: i32) -> (i32, i32) {
    %c0_i32 = arith.constant 0 : i32
    %c0_i32_0 = arith.constant 0 : i32
    %c0_i32_1 = arith.constant 0 : i32
    return %c0_i32, %c0_i32_0 : i32, i32
  }
  func.func @transform_3(%arg0: i32) -> (i32, i32) {
    %c0_i32 = arith.constant 0 : i32
    %c0_i32_0 = arith.constant 0 : i32
    %c0_i32_1 = arith.constant 0 : i32
    return %c0_i32, %c0_i32_0 : i32, i32
  }
  func.func @transform_4(%arg0: i32) -> (i32, i32) {
    %c0_i32 = arith.constant 0 : i32
    %c0_i32_0 = arith.constant 0 : i32
    %c0_i32_1 = arith.constant 0 : i32
    return %c0_i32, %c0_i32_0 : i32, i32
  }
  func.func @transform_5(%arg0: i32) -> (i32, i32) {
    %c0_i32 = arith.constant 0 : i32
    %c0_i32_0 = arith.constant 0 : i32
    %c0_i32_1 = arith.constant 0 : i32
    return %c0_i32, %c0_i32_0 : i32, i32
  }
  func.func @transform_6(%arg0: i32) -> (i32, i32) {
    %c0_i32 = arith.constant 0 : i32
    %c0_i32_0 = arith.constant 0 : i32
    %c0_i32_1 = arith.constant 0 : i32
    return %c0_i32, %c0_i32_0 : i32, i32
  }
  func.func @transform_7(%arg0: i32) -> (i32, i32) {
    %c0_i32 = arith.constant 0 : i32
    %c0_i32_0 = arith.constant 0 : i32
    return %arg0, %c0_i32 : i32, i32
  }
}

</mosaic_0001>

<bundles_post_ra>
// kernel: qnetwork_forward.1
= control target key start
LH: loop header
LB: loop body
LE: loop exit
PB: predicated region body
PF: predicated region fallthrough
CT: control target
= control target key end

     0   :  { %vm36_vm0 = vcmask 64512   ;;  %v427_v2 = vmov 0.0   ;;  %vm428_vm1 = vmmov 0   ;;  %s591_s0 = inlined_call_operand.vmem [shape: f32[2,8], index: 0, kind: input, shape index: {}]   ;;  %s592_s1 = inlined_call_operand.vmem [shape: f32[8,128], index: 1, kind: input, shape index: {}]   ;;  %s593_s2 = inlined_call_operand.vmem [shape: f32[1,128], index: 2, kind: input, shape index: {}]   ;;  %s594_s3 = inlined_call_operand.vmem [shape: f32[128,64], index: 3, kind: input, shape index: {}]   ;;  %s595_s4 = inlined_call_operand.vmem [shape: f32[1,64], index: 4, kind: input, shape index: {}]   ;;  %s596_s5 = inlined_call_operand.vmem [shape: f32[64,4], index: 5, kind: input, shape index: {}]   ;;  %s597_s6 = inlined_call_operand.vmem [shape: f32[1,4], index: 6, kind: input, shape index: {}]   ;;  %s598_s7 = inlined_call_operand.hbm [shape: f32[2,4], index: 7, kind: output, shape index: {}]  }
   0x1   :  { %v28_v0 = vld [vmem:[%s592_s1] sm:$0xff]  ;;  %343 = vmatprep.subr.mxu0 %v427_v2  ;;  %345 = vmatprep.mubr.msk.f32.mxu0 %vm428_vm1, %v427_v2  ;;  %v126_v3 = vld [vmem:[%s594_s3 + $0x78] sm:$0xff]  ;;  %v125_v4 = vld [vmem:[%s594_s3 + $0x70] sm:$0xff] }
   0x2   :  { %v27_v1 = vld [vmem:[%s591_s0] sm:$0x3]  ;;  %344 = vmatpush3.msra.mxu0 %v28_v0  ;;  %348 = vmatprep.subr.mxu1 %v427_v2  ;;  %v124_v5 = vld [vmem:[%s594_s3 + $0x68] sm:$0xff] }
   0x3   :  { %346 = vmatmul.mubr.msk.f32.vlgmr.msra.gmra.mxu0 %vm36_vm0, %v27_v1  ;;  %349 = vmatpush3.msra.mxu1 %v126_v3 }
   0x4   :  { %350 = vmatprep.subr.mxu1 %v427_v2  ;;  %380 = vmatprep.mubr.msk.f32.mxu1 %vm428_vm1, %v427_v2 }
   0x5   :  { %351 = vmatpush3.msra.mxu1 %v125_v4  ;;  %383 = vmatprep.subr.mxu0 %v427_v2 }
   0x6   :  { %12 = vsyncpa [#allocation3], 0  ;;  %352 = vmatprep.subr.mxu1 %v427_v2  ;;  %v123_v6 = vld [vmem:[%s594_s3 + $0x60] sm:$0xff]  ;;  %399 = vmatprep.mubr.msk.f32.mxu0 %vm428_vm1, %v427_v2  ;;  %v122_v7 = vld [vmem:[%s594_s3 + $0x58] sm:$0xff]  ;;  %vm220_vm2 = vcmask 523264   ;;  %s429_s1 = smov [#allocation2]  }
   0x7   :  { %353 = vmatpush3.msra.mxu1 %v124_v5  ;;  %v121_v8 = vld [vmem:[%s594_s3 + $0x50] sm:$0xff]  ;;  %v120_v9 = vld [vmem:[%s594_s3 + $0x48] sm:$0xff]  ;;  %v119_v10 = vld [vmem:[%s594_s3 + $0x40] sm:$0xff]  ;;  %s302_s30 = sshll.u32 %s429_s1, 4  ;;  %vm294_vm3 = vcmask 25600   ;;  %s303_s30 = int_to_ptr.vmem [resolvable:$true] %s302_s30 }
   0x8   :  { %354 = vmatprep.subr.mxu1 %v427_v2  ;;  %v118_v11 = vld [vmem:[%s594_s3 + $0x38] sm:$0xff]  ;;  %v117_v12 = vld [vmem:[%s594_s3 + $0x30] sm:$0xff]  ;;  %v116_v13 = vld [vmem:[%s594_s3 + $0x28] sm:$0xff]  ;;  %p410_p1 = scmp.lt.s32.totalorder %s303_s30, %s303_s30 }
   0x9   :  { %355 = vmatpush3.msra.mxu1 %v123_v6  ;;  %v115_v14 = vld [vmem:[%s594_s3 + $0x20] sm:$0xff]  ;;  %v114_v15 = vld [vmem:[%s594_s3 + $0x18] sm:$0xff]  ;;  %v113_v16 = vld [vmem:[%s594_s3 + $0x10] sm:$0xff] }
   0xa   :  { %356 = vmatprep.subr.mxu1 %v427_v2  ;;  %v112_v17 = vld [vmem:[%s594_s3 + $0x8] sm:$0xff]  ;;  %v111_v18 = vld [vmem:[%s594_s3] sm:$0xff]  ;;  %v212_v19 = vld [vmem:[%s596_s5 + $0x38] sm:$0xff] }
   0xb   :  { %357 = vmatpush3.msra.mxu1 %v122_v7  ;;  %v211_v20 = vld [vmem:[%s596_s5 + $0x30] sm:$0xff]  ;;  %384 = vmatpush3.msra.mxu0 %v212_v19  ;;  %v210_v21 = vld [vmem:[%s596_s5 + $0x28] sm:$0xff]  ;;  %v209_v22 = vld [vmem:[%s596_s5 + $0x20] sm:$0xff] }
   0xc   :  { %358 = vmatprep.subr.mxu1 %v427_v2  ;;  %385 = vmatprep.subr.mxu0 %v427_v2  ;;  %v208_v23 = vld [vmem:[%s596_s5 + $0x18] sm:$0xff]  ;;  %v310_v24 = vld [vmem:[%s593_s2] ss:$0 sm:$0xff]  ;;  %v207_v29 = vld [vmem:[%s596_s5 + $0x10] sm:$0xff] }
   0xd   :  { %359 = vmatpush3.msra.mxu1 %v121_v8  ;;  %386 = vmatpush3.msra.mxu0 %v211_v20  ;;  %v206_v30 = vld [vmem:[%s596_s5 + $0x8] sm:$0xff]  ;;  %v205_v31 = vld [vmem:[%s596_s5] sm:$0xff]  ;;  %s405_s5 = scalar_lea.vmem %s303_s30, 32 }
   0xe   :  { %360 = vmatprep.subr.mxu1 %v427_v2  ;;  %387 = vmatprep.subr.mxu0 %v427_v2  ;;  %v312_v32 = vld [vmem:[%s595_s4] ss:$0 sm:$0xff]  ;;  %p406_p0 = scmp.ne.s32.totalorder %s303_s30, %s405_s5  ;;  %p411_p2 = scmp.lt.s32.totalorder %s405_s5, %s405_s5 }
   0xf   :  { %361 = vmatpush3.msra.mxu1 %v120_v9  ;;  %388 = vmatpush3.msra.mxu0 %v210_v21  ;;  %v313_v37 = vld [vmem:[%s597_s6] ss:$0 sm:$0xff] }
  0x10   :  { %362 = vmatprep.subr.mxu1 %v427_v2  ;;  %389 = vmatprep.subr.mxu0 %v427_v2  ;;  %p412_p3 = por %p411_p2, %p410_p1 }
  0x11   :  { %363 = vmatpush3.msra.mxu1 %v119_v10  ;;  %390 = vmatpush3.msra.mxu0 %v209_v22 }
  0x12   :  { %364 = vmatprep.subr.mxu1 %v427_v2  ;;  %391 = vmatprep.subr.mxu0 %v427_v2  ;;  %p413_p4 = pnand %p412_p3, %p406_p0 }
  0x13   :  { %365 = vmatpush3.msra.mxu1 %v118_v11  ;;  %392 = vmatpush3.msra.mxu0 %v208_v23 }
  0x14   :  { %366 = vmatprep.subr.mxu1 %v427_v2  ;;  %393 = vmatprep.subr.mxu0 %v427_v2 }
  0x15   :  { %367 = vmatpush3.msra.mxu1 %v117_v12  ;;  %394 = vmatpush3.msra.mxu0 %v207_v29 }
  0x16   :  { %368 = vmatprep.subr.mxu1 %v427_v2  ;;  %395 = vmatprep.subr.mxu0 %v427_v2 }
  0x17   :  { %369 = vmatpush3.msra.mxu1 %v116_v13  ;;  %396 = vmatpush3.msra.mxu0 %v206_v30 }
  0x18   :  { %370 = vmatprep.subr.mxu1 %v427_v2  ;;  %397 = vmatprep.subr.mxu0 %v427_v2 }
  0x19   :  { %371 = vmatpush3.msra.mxu1 %v115_v14  ;;  %398 = vmatpush3.msra.mxu0 %v205_v31 }
  0x1a   :  { %372 = vmatprep.subr.mxu1 %v427_v2 }
  0x1b   :  { %373 = vmatpush3.msra.mxu1 %v114_v15 }
  0x1c   :  { %374 = vmatprep.subr.mxu1 %v427_v2 }
  0x1d   :  { %375 = vmatpush3.msra.mxu1 %v113_v16 }
  0x1e   :  { %376 = vmatprep.subr.mxu1 %v427_v2 }
  0x1f   :  { %377 = vmatpush3.msra.mxu1 %v112_v17 }
  0x20   :  { %378 = vmatprep.subr.mxu1 %v427_v2 }
  0x21   :  { %379 = vmatpush3.msra.mxu1 %v111_v18 }
  0xc3   :  { %v106_v25 = vpop.f32.mrf.mxu0 }
  0xc4   :  { %v107_v26 = vadd.f32 %v310_v24, %v106_v25 }
  0xc5   :  { %v347_v27 = vpop.f32.mrf.mxu0 }
  0xc6   :  { %v110_v28 = vmax.f32 %v107_v26, 0.0 }
  0xc8   :  { %381 = vmatmul.mubr.f32.vlgmr.msra.gmra.mxu1 %v110_v28 }
 0x188   :  { %v200_v33 = vpop.f32.mrf.mxu1 }
 0x189   :  { %v201_v34 = vadd.f32 %v312_v32, %v200_v33 }
 0x18a   :  { %v382_v35 = vpop.f32.mrf.mxu1 }
 0x18b   :  { %v204_v36 = vmax.f32 %v201_v34, 0.0 }
 0x18d   :  { %400 = vmatmul.mubr.msk.f32.vlgmr.msra.gmra.mxu0 %vm220_vm2, %v204_v36 }
 0x24d   :  { %v290_v38 = vpop.f32.mrf.mxu0 }
 0x24e   :  { %v291_v39 = vadd.f32 %v313_v37, %v290_v38 }
 0x24f   :  { %v401_v40 = vpop.f32.mrf.mxu0 }
 0x250   :  { %295 = vst.msk [vmem:[#allocation2] sm:$0x3] %vm294_vm3, %v291_v39 }
 0x251   :  { %416 = shalt.err (!%p413_p4)
}
 0x252   :  { %305 = dma.vmem_to_hbm [thread:$0]  %s303_s30, 32, %s598_s7, [#allocation3]  }
 0x253   :  { %425 = dma.done.wait [#allocation3], 32  }
 0x254   :  { %426 = vsyncadd [#allocation3], 4294967264 }
 0x255   :  { %309 = vsyncpa [#allocation3], 1 }

</bundles_post_ra>
